<compile_context>
chip_gen: v7x
topology: tpu7x:2x2x1
jax: 0.10.0
libtpu: 0.0.40
codegen_flags: <defaults>
</compile_context>

<pallas_src>
import jax
import jax.numpy as jnp
from jax.experimental import pallas as pl
from jax.experimental.pallas import tpu as pltpu


def _round_up(n, m):
    return ((n + m - 1) // m) * m


# -----------------------------------------------------------------------------
# Kernel: fused 3-layer MLP, feature-major (batch on the 128-lane axis).
#   x_ref  : (d_in,  TB)      w0t_ref: (H, d_in)    b0_ref: (H, 1)
#   w1t_ref: (H, H)           b1_ref : (H, 1)
#   w2t_ref: (d_out, H)       b2_ref : (d_out, 1)
#   o_ref  : (d_out, TB)
# -----------------------------------------------------------------------------
def netg_mlp_kernel(x_ref, w0t_ref, b0_ref, w1t_ref, b1_ref, w2t_ref, b2_ref,
                    o_ref):
    def leaky_relu(v):
        # slope 0.1 < 1 => max(v, 0.1*v) == LeakyReLU(0.1); 2 VALU ops.
        return jnp.maximum(v, 0.1 * v)

    x = x_ref[...].astype(jnp.float32)            # (d_in, TB)
    w0t = w0t_ref[...]                            # (H, d_in)
    d_in = w0t.shape[1]

    # --- Layer 0: contraction dim d_in (=2) is far too small for the MXU.
    # Keep it as d_in broadcast multiply-adds on the VPU (statically unrolled).
    h = b0_ref[...]                               # (H, 1), broadcasts over lanes
    for k in range(d_in):
        h = h + w0t[:, k:k + 1] * x[k:k + 1, :]   # (H,1)*(1,TB) -> (H,TB)
    h = leaky_relu(h)

    # --- Layer 1: (H,H) @ (H,TB) on the MXU, f32 accumulation.
    h = jnp.dot(w1t_ref[...], h, preferred_element_type=jnp.float32) + b1_ref[...]
    h = leaky_relu(h)

    # --- Layer 2: (d_out,H) @ (H,TB) also on the MXU — the MXU slot is idle
    # after layer 1, and this sheds ~32 VALU ops + ~16 sublane broadcasts per
    # vreg that the old unrolled loop cost.  Output stays lane-dense.
    o = jnp.dot(w2t_ref[...], h, preferred_element_type=jnp.float32) + b2_ref[...]
    o_ref[...] = o.astype(o_ref.dtype)


# -----------------------------------------------------------------------------
# Core entry point: feature-major (features, batch) in and out.  Preferred when
# the surrounding GAN step can keep that layout end-to-end (no transposes).
# -----------------------------------------------------------------------------
def netg_forward_t(x_t, params, *, tile_b=None, out_dtype=None):
    (w0, b0), (w1, b1), (w2, b2) = params
    d_in, B = x_t.shape
    H = w0.shape[1]
    d_out = w2.shape[1]
    out_dtype = out_dtype or x_t.dtype

    MAX_TILE_B = 32768                      # few MiB of VMEM/step on all chips
    b128 = _round_up(max(B, 1), 128)        # lane-dense lower bound

    if tile_b is None:
        # Big tiles (>=8192 lanes) to amortize the ~0.35us per-step overhead,
        # aiming for a small number (~<=8) of grid steps.
        tile_b = min(MAX_TILE_B, max(8192, _round_up(pl.cdiv(b128, 8), 128)))
    assert tile_b % 128 == 0, "batch tile must be a multiple of the 128-lane axis"
    tile_b = min(tile_b, b128)
    # Guarantee >= 2 parallel grid steps whenever the batch allows it so both
    # v7x TensorCores get work (harmless on single-TC v5e/v6e).
    if b128 >= 256:
        tile_b = min(tile_b, _round_up(b128 // 2, 128))

    n_tiles = pl.cdiv(B, tile_b)
    Bp = n_tiles * tile_b

    # Pad only the ragged tail (no full zero+set copy of x).
    if Bp != B:
        x_t = jnp.pad(x_t, ((0, 0), (0, Bp - B)))

    w0t, w1t, w2t = w0.T, w1.T, w2.T                   # (H,d_in), (H,H), (d_out,H)
    b0c = b0.reshape(H, 1)
    b1c = b1.reshape(H, 1)
    b2c = b2.reshape(d_out, 1)

    # Batch-tiled blocks for x / out; full-array resident blocks for weights.
    x_spec = pl.BlockSpec((d_in, tile_b), lambda i: (0, i))
    o_spec = pl.BlockSpec((d_out, tile_b), lambda i: (0, i))
    w0_spec = pl.BlockSpec((H, d_in), lambda i: (0, 0))
    b0_spec = pl.BlockSpec((H, 1), lambda i: (0, 0))
    w1_spec = pl.BlockSpec((H, H), lambda i: (0, 0))
    b1_spec = pl.BlockSpec((H, 1), lambda i: (0, 0))
    w2_spec = pl.BlockSpec((d_out, H), lambda i: (0, 0))
    b2_spec = pl.BlockSpec((d_out, 1), lambda i: (0, 0))

    itemsize = jnp.dtype(x_t.dtype).itemsize
    n_param = d_in * H + H * H + H * d_out + 2 * H + d_out
    cost = pl.CostEstimate(
        flops=2 * Bp * (d_in * H + H * H + H * d_out),
        transcendentals=0,
        bytes_accessed=int(itemsize * (Bp * (d_in + d_out) + n_param)),
    )

    out_t = pl.pallas_call(
        netg_mlp_kernel,
        out_shape=jax.ShapeDtypeStruct((d_out, Bp), out_dtype),
        grid_spec=pltpu.PrefetchScalarGridSpec(
            num_scalar_prefetch=0,
            grid=(n_tiles,),
            in_specs=[x_spec, w0_spec, b0_spec, w1_spec, b1_spec, w2_spec, b2_spec],
            out_specs=o_spec,
        ),
        compiler_params=pltpu.CompilerParams(
            dimension_semantics=("parallel",),
        ),
        cost_estimate=cost,
    )(x_t, w0t, b0c, w1t, b1c, w2t, b2c)

    if Bp != B:
        out_t = out_t[:, :B]        # drop padded lanes (they hold garbage math)
    return out_t


# -----------------------------------------------------------------------------
# PyTorch-layout wrapper: (batch, features) in and out.
# -----------------------------------------------------------------------------
def netg_forward(x, params, *, tile_b=None, out_dtype=None):
    # TODO(synk): inside a full GAN step, prefer netg_forward_t with a
    # feature-major layout end-to-end; these transposes touch only 2-row
    # arrays, but they are still separate XLA ops around a tiny kernel.
    out_t = netg_forward_t(x.T, params, tile_b=tile_b, out_dtype=out_dtype)
    return out_t.T


# -----------------------------------------------------------------------------
# Deterministic parameter init (mimics torch.nn.Linear default init:
# U(-1/sqrt(fan_in), 1/sqrt(fan_in)) for both weight and bias).
# Stored as (in_features, out_features) / (1, out_features).
# -----------------------------------------------------------------------------
def init_linear(key, fan_in, fan_out, dtype=jnp.float32):
    kw, kb = jax.random.split(key)
    bound = 1.0 / jnp.sqrt(jnp.asarray(fan_in, dtype))
    w = jax.random.uniform(kw, (fan_in, fan_out), dtype, -bound, bound)
    b = jax.random.uniform(kb, (1, fan_out), dtype, -bound, bound)
    return w, b


def init_netg_params(key, in_dim=2, n_units=16, latent_dim_gen=1, dtype=jnp.float32):
    k0, k1, k2 = jax.random.split(key, 3)
    p0 = init_linear(k0, latent_dim_gen * in_dim, n_units, dtype)   # input layer
    p1 = init_linear(k1, n_units, n_units, dtype)                   # hidden layer (num_layers=1)
    p2 = init_linear(k2, n_units, in_dim, dtype)                    # output layer
    return (p0, p1, p2)


def netg_forward_ref(x, params):
    """Plain-JAX reference of the same forward pass (for sanity checking)."""
    (w0, b0), (w1, b1), (w2, b2) = params
    h = x @ w0 + b0
    h = jnp.where(h > 0, h, 0.1 * h)
    h = h @ w1 + b1
    h = jnp.where(h > 0, h, 0.1 * h)
    return h @ w2 + b2


if __name__ == "__main__":
    key = jax.random.PRNGKey(0)
    kx, kp = jax.random.split(key)

    in_dim = 2
    n_units = 16
    latent_dim_gen = 1
    batch = 500       # not a multiple of 128/256: exercises tail padding and
                      # the >=2-grid-step clamp (tile_b auto-resolves to 256)

    params = init_netg_params(kp, in_dim=in_dim, n_units=n_units,
                              latent_dim_gen=latent_dim_gen)
    x = jax.random.normal(kx, (batch, latent_dim_gen * in_dim), dtype=jnp.float32)

    out = netg_forward(x, params)
    out = jax.block_until_ready(out)

    ref = netg_forward_ref(x, params)
    assert out.shape == (batch, in_dim)
    assert jnp.allclose(out, ref, atol=1e-5, rtol=1e-5), float(
        jnp.max(jnp.abs(out - ref)))

    print("KERNEL_OK")
</pallas_src>

<mosaic_0001>
module attributes {stable_mosaic.version = 11 : i64} {
  func.func @netg_mlp_kernel(%arg0: i32, %arg1: memref<2x256xf32, #tpu.memory_space<vmem>>, %arg2: memref<16x2xf32, #tpu.memory_space<vmem>>, %arg3: memref<16x1xf32, #tpu.memory_space<vmem>>, %arg4: memref<16x16xf32, #tpu.memory_space<vmem>>, %arg5: memref<16x1xf32, #tpu.memory_space<vmem>>, %arg6: memref<2x16xf32, #tpu.memory_space<vmem>>, %arg7: memref<2x1xf32, #tpu.memory_space<vmem>>, %arg8: memref<2x256xf32, #tpu.memory_space<vmem>>) attributes {dimension_semantics = [#tpu.dimension_semantics<parallel>], iteration_bounds = array<i64: 2>, scalar_prefetch = 0 : i64, scratch_operands = 0 : i64, tpu.core_type = #tpu.core_type<tc>, window_params = [{transform_indices = @transform_0, window_bounds = array<i64: 2, 256>}, {pipeline_mode = #tpu.pipeline_mode<synchronous>, transform_indices = @transform_1, window_bounds = array<i64: 16, 2>}, {pipeline_mode = #tpu.pipeline_mode<synchronous>, transform_indices = @transform_2, window_bounds = array<i64: 16, 1>}, {pipeline_mode = #tpu.pipeline_mode<synchronous>, transform_indices = @transform_3, window_bounds = array<i64: 16, 16>}, {pipeline_mode = #tpu.pipeline_mode<synchronous>, transform_indices = @transform_4, window_bounds = array<i64: 16, 1>}, {pipeline_mode = #tpu.pipeline_mode<synchronous>, transform_indices = @transform_5, window_bounds = array<i64: 2, 16>}, {pipeline_mode = #tpu.pipeline_mode<synchronous>, transform_indices = @transform_6, window_bounds = array<i64: 2, 1>}, {transform_indices = @transform_7, window_bounds = array<i64: 2, 256>}]} {
    %c0 = arith.constant 0 : index
    %c0_0 = arith.constant 0 : index
    %0 = vector.load %arg1[%c0, %c0_0] : memref<2x256xf32, #tpu.memory_space<vmem>>, vector<2x256xf32>
    %c0_1 = arith.constant 0 : index
    %c0_2 = arith.constant 0 : index
    %1 = vector.load %arg2[%c0_1, %c0_2] : memref<16x2xf32, #tpu.memory_space<vmem>>, vector<16x2xf32>
    %c0_3 = arith.constant 0 : index
    %c0_4 = arith.constant 0 : index
    %2 = vector.load %arg3[%c0_3, %c0_4] : memref<16x1xf32, #tpu.memory_space<vmem>>, vector<16x1xf32>
    %3 = vector.extract_strided_slice %1 {offsets = [0, 0], sizes = [16, 1], strides = [1, 1]} : vector<16x2xf32> to vector<16x1xf32>
    %4 = vector.extract_strided_slice %0 {offsets = [0, 0], sizes = [1, 256], strides = [1, 1]} : vector<2x256xf32> to vector<1x256xf32>
    %5 = vector.broadcast %3 : vector<16x1xf32> to vector<16x256xf32>
    %6 = vector.broadcast %4 : vector<1x256xf32> to vector<16x256xf32>
    %7 = arith.mulf %5, %6 : vector<16x256xf32>
    %8 = vector.broadcast %2 : vector<16x1xf32> to vector<16x256xf32>
    %9 = arith.addf %8, %7 : vector<16x256xf32>
    %10 = vector.extract_strided_slice %1 {offsets = [0, 1], sizes = [16, 1], strides = [1, 1]} : vector<16x2xf32> to vector<16x1xf32>
    %11 = vector.extract_strided_slice %0 {offsets = [1, 0], sizes = [1, 256], strides = [1, 1]} : vector<2x256xf32> to vector<1x256xf32>
    %12 = vector.broadcast %10 : vector<16x1xf32> to vector<16x256xf32>
    %13 = vector.broadcast %11 : vector<1x256xf32> to vector<16x256xf32>
    %14 = arith.mulf %12, %13 : vector<16x256xf32>
    %15 = arith.addf %9, %14 : vector<16x256xf32>
    %cst = arith.constant 1.000000e-01 : f32
    %16 = vector.broadcast %cst : f32 to vector<16x256xf32>
    %17 = arith.mulf %16, %15 : vector<16x256xf32>
    %18 = arith.maximumf %15, %17 : vector<16x256xf32>
    %c0_5 = arith.constant 0 : index
    %c0_6 = arith.constant 0 : index
    %19 = vector.load %arg4[%c0_5, %c0_6] : memref<16x16xf32, #tpu.memory_space<vmem>>, vector<16x16xf32>
    %cst_7 = arith.constant dense<0.000000e+00> : vector<16x256xf32>
    %20 = tpu.matmul %19, %18, %cst_7 {dimension_numbers = #tpu.dot_dimension_numbers<[1], [0], [0], [1], [0, 0, 1, 1], [], []>} : vector<16x16xf32>, vector<16x256xf32>, vector<16x256xf32> -> vector<16x256xf32>
    %c0_8 = arith.constant 0 : index
    %c0_9 = arith.constant 0 : index
    %21 = vector.load %arg5[%c0_8, %c0_9] : memref<16x1xf32, #tpu.memory_space<vmem>>, vector<16x1xf32>
    %22 = vector.broadcast %21 : vector<16x1xf32> to vector<16x256xf32>
    %23 = arith.addf %20, %22 : vector<16x256xf32>
    %cst_10 = arith.constant 1.000000e-01 : f32
    %24 = vector.broadcast %cst_10 : f32 to vector<16x256xf32>
    %25 = arith.mulf %24, %23 : vector<16x256xf32>
    %26 = arith.maximumf %23, %25 : vector<16x256xf32>
    %c0_11 = arith.constant 0 : index
    %c0_12 = arith.constant 0 : index
    %27 = vector.load %arg6[%c0_11, %c0_12] : memref<2x16xf32, #tpu.memory_space<vmem>>, vector<2x16xf32>
    %cst_13 = arith.constant dense<0.000000e+00> : vector<2x256xf32>
    %28 = tpu.matmul %27, %26, %cst_13 {dimension_numbers = #tpu.dot_dimension_numbers<[1], [0], [0], [1], [0, 0, 1, 1], [], []>} : vector<2x16xf32>, vector<16x256xf32>, vector<2x256xf32> -> vector<2x256xf32>
    %c0_14 = arith.constant 0 : index
    %c0_15 = arith.constant 0 : index
    %29 = vector.load %arg7[%c0_14, %c0_15] : memref<2x1xf32, #tpu.memory_space<vmem>>, vector<2x1xf32>
    %30 = vector.broadcast %29 : vector<2x1xf32> to vector<2x256xf32>
    %31 = arith.addf %28, %30 : vector<2x256xf32>
    %c0_16 = arith.constant 0 : index
    %c0_17 = arith.constant 0 : index
    %32 = vector.load %arg8[%c0_16, %c0_17] : memref<2x256xf32, #tpu.memory_space<vmem>>, vector<2x256xf32>
    tpu.vector_store %arg8[%c0_16, %c0_17], %31 {strides = array<i32>} : memref<2x256xf32, #tpu.memory_space<vmem>>, vector<2x256xf32>,
    return
  }
  func.func @transform_0(%arg0: i32) -> (i32, i32) {
    %c0_i32 = arith.constant 0 : i32
    %c0_i32_0 = arith.constant 0 : i32
    return %c0_i32, %arg0 : i32, i32
  }
  func.func @transform_1(%arg0: i32) -> (i32, i32) {
    %c0_i32 = arith.constant 0 : i32
    %c0_i32_0 = arith.constant 0 : i32
    %c0_i32_1 = arith.constant 0 : i32
    return %c0_i32, %c0_i32_0 : i32, i32
  }
  func.func @transform_2(%arg0: i32) -> (i32, i32) {
    %c0_i32 = arith.constant 0 : i32
    %c0_i32_0 = arith.constant 0 : i32
    %c0_i32_1 = arith.constant 0 : i32
    return %c0_i32, %c0_i32_0 : i32, i32
  }
  func.func @transform_3(%arg0: i32) -> (i32, i32) {
    %c0_i32 = arith.constant 0 : i32
    %c0_i32_0 = arith.constant 0 : i32
    %c0_i32_1 = arith.constant 0 : i32
    return %c0_i32, %c0_i32_0 : i32, i32
  }
  func.func @transform_4(%arg0: i32) -> (i32, i32) {
    %c0_i32 = arith.constant 0 : i32
    %c0_i32_0 = arith.constant 0 : i32
    %c0_i32_1 = arith.constant 0 : i32
    return %c0_i32, %c0_i32_0 : i32, i32
  }
  func.func @transform_5(%arg0: i32) -> (i32, i32) {
    %c0_i32 = arith.constant 0 : i32
    %c0_i32_0 = arith.constant 0 : i32
    %c0_i32_1 = arith.constant 0 : i32
    return %c0_i32, %c0_i32_0 : i32, i32
  }
  func.func @transform_6(%arg0: i32) -> (i32, i32) {
    %c0_i32 = arith.constant 0 : i32
    %c0_i32_0 = arith.constant 0 : i32
    %c0_i32_1 = arith.constant 0 : i32
    return %c0_i32, %c0_i32_0 : i32, i32
  }
  func.func @transform_7(%arg0: i32) -> (i32, i32) {
    %c0_i32 = arith.constant 0 : i32
    %c0_i32_0 = arith.constant 0 : i32
    return %c0_i32, %arg0 : i32, i32
  }
}

</mosaic_0001>

<bundles_post_ra>
// kernel: tpu_custom_call.1
= control target key start
LH: loop header
LB: loop body
LE: loop exit
PB: predicated region body
PF: predicated region fallthrough
CT: control target
= control target key end

     0   :  { %12 = vsyncpa [#allocation3], 0  ;;  %s963_s0 = inlined_call_operand.vmem [shape: f32[2,512], index: 0, kind: input, shape index: {}]   ;;  %s964_s1 = inlined_call_operand.vmem [shape: f32[16,2], index: 1, kind: input, shape index: {}]   ;;  %s965_s2 = inlined_call_operand.vmem [shape: f32[16,1], index: 2, kind: input, shape index: {}]   ;;  %s966_s3 = inlined_call_operand.vmem [shape: f32[16,16], index: 3, kind: input, shape index: {}]   ;;  %s967_s4 = inlined_call_operand.vmem [shape: f32[16,1], index: 4, kind: input, shape index: {}]   ;;  %s968_s5 = inlined_call_operand.vmem [shape: f32[2,16], index: 5, kind: input, shape index: {}]   ;;  %s969_s6 = inlined_call_operand.vmem [shape: f32[2,1], index: 6, kind: input, shape index: {}]   ;;  %s970_s7 = inlined_call_operand.hbm [shape: f32[2,512], index: 7, kind: output, shape index: {}]  }
   0x1   :  { %14 = vsyncpa [#allocation3 + $0x1], 0  ;;  %s828_s24 = smov 0   ;;  %s830_s25 = smov 0  }
   0x2   :  { %s832_s26 = smov 0   ;;  %s834_s27 = smov 0  }
   0x3 LB: > { %s849_s28 = sadd.s32 4294967295, %s782_s27   ;;  %s647_s29 = sadd.s32 4294967294, %s782_s27   ;;  %s782_s27 = sphi %s834_s27, %s976_s27   ;;  %s778_s26 = sphi %s832_s26, %s975_s26   ;;  %s774_s25 = sphi %s830_s25, %s974_s25   ;;  %s770_s24 = sphi %s828_s24, %s973_s24  }
   0x4   : > { %s853_s30 = sadd.s32 1, %s782_s27   ;;  %s179_s8 = sadd.s32 1, %s778_s26 }
   0x5   : > { %s176_s9 = ssub.s32 %s782_s27, %s853_s30  ;;  %p189_p0 = scmp.ne.s32.totalorder %s778_s26, %s774_s25 }
   0x6   : > { %p177_p1 = scmp.eq.s32.totalorder %s176_s9, 0  ;;  %p190_p2 = scmp.eq.s32.totalorder %s849_s28, 1 }
   0x7   : > { %p195_p3 = scmp.ne.s32.totalorder %s774_s25, %s770_s24  ;;  %p196_p4 = scmp.eq.s32.totalorder %s647_s29, 1 }
   0x8   : > { %s864_s10 = scalar_select %p177_p1, %s778_s26, %s179_s8  }
   0x9   : > { %p866_p5 = por %p190_p2, %p189_p0  ;;  %p870_p6 = por %p196_p4, %p195_p3 }
   0xa   : > { %p650_p7 = scmp.ge.s32.totalorder %s782_s27, 1  ;;  %p241_p8 = scmp.lt.s32.totalorder %s782_s27, 3 }
   0xc   : > { %p242_p9 = pnand %p650_p7, %p241_p8 }
   0xd   : > { %v283_v0 = vld [vmem:[%s965_s2] sm:$0xff] (!%p242_p9)  ;;  %v784_v2 = vmov (!%p242_p9), 0   ;;  %v284_v3 = vld [vmem:[%s965_s2 + $0x8] sm:$0xff] (!%p242_p9)  ;;  %v785_v5 = vmov (!%p242_p9), 1   ;;  %v786_v6 = vmov (!%p242_p9), 0.0   ;;  %s652_s13 = sshll.u32 (!%p242_p9), %s849_s28, 1  ;;  %v296_v10 = vlaneseq (!%p242_p9) }
   0xe   : > { %245 = sbr.rel (%p242_p9) target bundleno = 626 (0x272), region = 48  ;;  %v281_v1 = vld [vmem:[%s964_s1] sm:$0xff] (!%p242_p9)  ;;  %715 = vset.pattern.permute.xlu1 (!%p242_p9), %v784_v2  ;;  %714 = vset.pattern.permute.xlu0 (!%p242_p9), %v784_v2  ;;  %v282_v4 = vld [vmem:[%s964_s1 + $0x8] sm:$0xff] (!%p242_p9)  ;;  %p274_p10 = scmp.lt.s32.totalorder (!%p242_p9), %s652_s13, 3  ;;  %vm388_vm0 = vcmask (!%p242_p9), 130048  }
   0xf   : > { %320 = vperm.xlu1 (!%p242_p9), %715, %v283_v0   ;;  %287 = vperm.xlu0 (!%p242_p9), %714, %v281_v1   ;;  %v376_v7 = vld [vmem:[%s967_s4] sm:$0xff] (!%p242_p9)  ;;  %v377_v8 = vld [vmem:[%s967_s4 + $0x8] sm:$0xff] (!%p242_p9)  ;;  %v297_v11 = vshrl.u32 (!%p242_p9), %v296_v10, 7  ;;  %s270_s29 = sand.u32 (!%p242_p9), 1, %s774_s25   ;;  %s663_s9 = sshll.u32 (!%p242_p9), %s849_s28, 6 }
  0x10   : > { %459 = vmatprep.mubr.f32.mxu0 (!%p242_p9), %v786_v6  ;;  %554 = vmatprep.mubr.f32.mxu1 (!%p242_p9), %v786_v6  ;;  %v481_v9 = vld [vmem:[%s969_s6] sm:$0x3] (!%p242_p9)  ;;  %v375_v58 = vld [vmem:[%s966_s3 + $0x8] sm:$0xff] (!%p242_p9)  ;;  %s651_s8 = sshll.u32 (!%p242_p9), %s270_s29, 2  ;;  %s574_s18 = scalar_lea.sflag (!%p242_p9), [#allocation3], %s270_s29 }
  0x11   : > { %v298_v12 = vsub.s32 (!%p242_p9), 0, %v297_v11  ;;  %v302_v13 = vsub.s32 (!%p242_p9), 2, %v297_v11  ;;  %v342_v17 = vsub.s32 (!%p242_p9), 1, %v297_v11  ;;  %v346_v18 = vsub.s32 (!%p242_p9), 3, %v297_v11  ;;  %v374_v57 = vld [vmem:[%s966_s3] sm:$0xff] (!%p242_p9)  ;;  %s787_s28 = smov (!%p242_p9), [#allocation2]  }
  0x12   : > { %s724_s20 = sshll.u32 (!%p242_p9), %s787_s28, 4  ;;  %s725_s20 = int_to_ptr.vmem [resolvable:$false] %s724_s20 }
  0x13   : > { %325 = vperm.xlu1 (!%p242_p9), %715, %v284_v3   ;;  %292 = vperm.xlu0 (!%p242_p9), %714, %v282_v4   ;;  %s726_s21 = scalar_lea.vmem (!%p242_p9), %s725_s20, 128 }
  0x15   : > { %s978_s13 = smov (!%p274_p10, %s652_s13), 3 }
  0x16   : > { %s653_s14 = sshll.u32 %s978_s13, 1  ;;  %s272_s13 = scalar_lea.vmem [#allocation2], %s651_s8 }
  0x17   : > { %717 = vset.pattern.permute.xlu1 %v785_v5  ;;  %716 = vset.pattern.permute.xlu0 %v785_v5  ;;  %s277_s17 = scalar_lea.vmem %s963_s0, %s653_s14  ;;  %s588_s14 = sshll.u32 %s272_s13, 4  ;;  %s923_s14 = int_to_ptr.vmem [resolvable:$true] %s588_s14 }
  0x18   : > { %337 = vperm.xlu1 %717, %v282_v4   ;;  %333 = vperm.xlu0 %716, %v281_v1   ;;  %v280_v14 = vld [vmem:[%s277_s17] sm:$0xf]  ;;  %s921_s17 = scalar_lea.hbm %s970_s7, %s663_s9  ;;  %s720_s19 = scalar_lea.vmem %s923_s14, 64 }
  0x19   : > { %v299_v15 = vrot.slane %v280_v14, %v298_v12  ;;  %v303_v16 = vrot.slane %v280_v14, %v302_v13  ;;  %v343_v23 = vrot.slane %v280_v14, %v342_v17  ;;  %v347_v24 = vrot.slane %v280_v14, %v346_v18  ;;  %p721_p11 = scmp.ne.s32.totalorder %s923_s14, %s720_s19  ;;  %p727_p0 = scmp.lt.s32.totalorder %s923_s14, %s725_s20 }
  0x1a   : > { %p728_p1 = scmp.lt.s32.totalorder %s726_s21, %s720_s19 }
  0x1b   : > { %v309_v21 = vrot.slane %v299_v15, %v298_v12  ;;  %v313_v22 = vrot.slane %v303_v16, %v298_v12  ;;  %v353_v31 = vrot.slane %v343_v23, %v342_v17  ;;  %v357_v32 = vrot.slane %v347_v24, %v342_v17  ;;  %v480_v15 = vld [vmem:[%s968_s5] sm:$0x3]  ;;  %p722_p12 = pnand %p721_p11, %p866_p5 }
  0x1c   : > { %718 = vset.pattern.permute.xlu1 %v784_v2  ;;  %719 = vset.pattern.permute.xlu0 %v784_v2  ;;  %p729_p2 = por %p728_p1, %p727_p0 }
  0x1d   : > { %380 = vperm.xlu1 %718, %v376_v7   ;;  %385 = vperm.xlu0 %719, %v377_v8   ;;  %p723_p13 = pneg %p722_p12 }
  0x1f   : > { %p730_p3 = pnand %p729_p2, %p723_p13 }
  0x21   : > { %484 = vperm.xlu1 %718, %v481_v9  }
  0x8e   : > { %v321_v19 = vpop.permute.xlu1 %320  ;;  %v288_v20 = vpop.permute.xlu0 %287 }
  0x8f   : > { %v314_v27 = vmul.f32 %v309_v21, %v288_v20  ;;  %v315_v28 = vmul.f32 %v313_v22, %v288_v20 }
  0x91   : > { %v328_v33 = vadd.f32 %v321_v19, %v314_v27  ;;  %v329_v34 = vadd.f32 %v321_v19, %v315_v28 }
  0x92   : > { %v326_v25 = vpop.permute.xlu1 %325  ;;  %v293_v26 = vpop.permute.xlu0 %292 }
  0x93   : > { %v316_v29 = vmul.f32 %v309_v21, %v293_v26  ;;  %v317_v30 = vmul.f32 %v313_v22, %v293_v26 }
  0x95   : > { %v330_v35 = vadd.f32 %v326_v25, %v316_v29  ;;  %v331_v36 = vadd.f32 %v326_v25, %v317_v30 }
  0x97   : > { %v338_v37 = vpop.permute.xlu1 %337  ;;  %v334_v38 = vpop.permute.xlu0 %333 }
  0x98   : > { %v360_v39 = vmul.f32 %v353_v31, %v338_v37  ;;  %v361_v40 = vmul.f32 %v357_v32, %v338_v37  ;;  %v358_v41 = vmul.f32 %v353_v31, %v334_v38  ;;  %v359_v42 = vmul.f32 %v357_v32, %v334_v38 }
  0x9a   : > { %v364_v43 = vadd.f32 %v360_v39, %v330_v35  ;;  %v365_v44 = vadd.f32 %v361_v40, %v331_v36  ;;  %v362_v45 = vadd.f32 %v358_v41, %v328_v33  ;;  %v363_v46 = vadd.f32 %v359_v42, %v329_v34 }
  0x9c   : > { %v367_v47 = vmul.f32 0.1, %v363_v46  ;;  %v369_v48 = vmul.f32 0.1, %v365_v44  ;;  %v366_v49 = vmul.f32 0.1, %v362_v45  ;;  %v381_v59 = vpop.permute.xlu1 %380  ;;  %v386_v0 = vpop.permute.xlu0 %385 }
  0x9d   : > { %v368_v50 = vmul.f32 0.1, %v364_v43 }
  0x9e   : > { %v371_v51 = vmax.f32 %v363_v46, %v367_v47  ;;  %v373_v52 = vmax.f32 %v365_v44, %v369_v48  ;;  %v370_v53 = vmax.f32 %v362_v45, %v366_v49 }
  0x9f   : > { %v372_v54 = vmax.f32 %v364_v43, %v368_v50 }
  0xa0   : > { %v664_v55 = vpack.c.bf16 %v373_v52, %v371_v51  ;;  %v485_v16 = vpop.permute.xlu1 %484 }
  0xa1   : > { %v666_v56 = vpack.c.bf16 %v372_v54, %v370_v53 }
  0xa2   : > { %665 = vmatprep.subr.bf16.mxu0 %v664_v55 }
  0xa3   : > { %667 = vmatpush1.bf16.msra.mxu0 %v666_v56 }
  0xa6   : > { %654 = vmatmul.mubr.msk.f32.vlgmr.msra.gmra.mrb[0].mxu0 %vm388_vm0, %v374_v57 }
  0xa7   : > { %465 = vmatprep.mubr.f32.mxu0 %v786_v6 }
  0xaa   : > { %655 = vmatmul.mubr.msk.f32.gmra.mrb[2].mxu0 %vm388_vm0, %v375_v58 }
 0x179   : > { %v461_v60 = vpop.f32.mrb[0].mxu0 }
 0x17a   : > { %v462_v61 = vadd.f32 %v461_v60, %v381_v59  ;;  %v463_v62 = vpop.f32.mrb[1].mxu0 }
 0x17b   : > { %v464_v63 = vadd.f32 %v463_v62, %v381_v59 }
 0x17c   : > { %v472_v2 = vmul.f32 0.1, %v462_v61 }
 0x17d   : > { %v467_v1 = vpop.f32.mrb[2].mxu0  ;;  %v473_v5 = vmul.f32 0.1, %v464_v63 }
 0x17e   : > { %v468_v3 = vadd.f32 %v467_v1, %v386_v0  ;;  %v469_v4 = vpop.f32.mrb[3].mxu0  ;;  %v476_v9 = vmax.f32 %v462_v61, %v472_v2 }
 0x17f   : > { %v470_v7 = vadd.f32 %v469_v4, %v386_v0  ;;  %v477_v11 = vmax.f32 %v464_v63, %v473_v5 }
 0x180   : > { %v474_v6 = vmul.f32 0.1, %v468_v3 }
 0x181   : > { %v475_v8 = vmul.f32 0.1, %v470_v7 }
 0x182   : > { %v478_v10 = vmax.f32 %v468_v3, %v474_v6 }
 0x183   : > { %v479_v12 = vmax.f32 %v470_v7, %v475_v8 }
 0x184   : > { %v670_v13 = vpack.c.bf16 %v478_v10, %v476_v9 }
 0x185   : > { %v668_v14 = vpack.c.bf16 %v479_v12, %v477_v11 }
 0x187   : > { %669 = vmatprep.subr.bf16.mxu1 %v668_v14 }
 0x188   : > { %671 = vmatpush1.bf16.msra.mxu1 %v670_v13 }
 0x18b   : > { %656 = vmatmul.mubr.msk.f32.vlgmr.msra.gmra.mrb[0].mxu1 %vm388_vm0, %v480_v15 }
 0x25e   : > { %v556_v17 = vpop.f32.mrb[0].mxu1 }
 0x25f   : > { %v557_v18 = vadd.f32 %v556_v17, %v485_v16  ;;  %v558_v19 = vpop.f32.mrb[1].mxu1 }
 0x260   : > { %v559_v20 = vadd.f32 %v558_v19, %v485_v16 }
 0x262   : > { %v563_v21 = vcombine.low %v557_v18, %v559_v20 }
 0x264   : > { %657 = vst.sshfl [vmem:[%s272_s13] sm:$0x33 pattern:$0x76325410] %v563_v21 }
 0x265   : > { %733 = shalt.err (!%p730_p3)
}
 0x266   : > { %s734_s22 = scalar_lea.hbm %s921_s17, 64  ;;  %s738_s8 = scalar_lea.hbm %s970_s7, 128 }
 0x267   : > { %p735_p4 = scmp.ne.s32.totalorder %s921_s17, %s734_s22  ;;  %p739_p9 = scmp.lt.u32.totalorder %s921_s17, %s970_s7 }
 0x268   : > { %p740_p10 = scmp.lt.u32.totalorder %s738_s8, %s734_s22  ;;  %p742_p12 = scmp.lt.u32.totalorder %s734_s22, %s921_s17 }
 0x269   : > { %p736_p7 = pnand %p735_p4, %p866_p5 }
 0x26a   : > { %p741_p11 = por %p740_p10, %p739_p9 }
 0x26b   : > { %p737_p8 = pneg %p736_p7 }
 0x26c   : > { %p743_p13 = por %p742_p12, %p741_p11 }
 0x26e   : > { %p744_p0 = pnand %p743_p13, %p737_p8 }
 0x270   : > { %747 = shalt.err (!%p744_p0)
}
 0x271   : > { %672 = dma.vmem_to_hbm [thread:$0]  (%p866_p5), %s923_s14, 64, %s921_s17, %s574_s18  }
 0x272 PF: > { %p678_p1 = scmp.ge.s32.totalorder %s782_s27, 2  ;;  %s600_s15 = sand.u32 1, %s770_s24  }
 0x273   : > { %s601_s16 = scalar_lea.sflag [#allocation3], %s600_s15 }
 0x274   : > { %p675_p2 = pnand %p678_p1, %p870_p6 }
 0x276   : > { %765 = dma.done.wait (!%p675_p2), %s601_s16, 64  }
 0x277   : > { %767 = vsyncadd (!%p675_p2), %s601_s16, 4294967232  ;;  %p17_p3 = scmp.ge.s32.totalorder %s853_s30, 4   ;;  %s973_s24 = smov %s774_s25 }
 0x278   : > { %s974_s25 = smov %s778_s26  ;;  %s975_s26 = smov %s864_s10 }
 0x279   : > { %s976_s27 = smov %s853_s30  ;;  %19 = sbr.rel (!%p17_p3) target bundleno = 3 (0x3), region = 83 }
 0x280   :  { %606 = vsyncpa [#allocation3], 1 }
 0x281   :  { %608 = vsyncpa [#allocation3 + $0x1], 1 }

</bundles_post_ra>
